<compile_context>
chip_gen: v5e
topology: v5e:2x2
jax: 0.10.0
libtpu: 0.0.40
codegen_flags: <defaults>
</compile_context>

<pallas_src>
import jax
import jax.numpy as jnp
from jax import lax
from jax.experimental import pallas as pl
from jax.experimental.pallas import tpu as pltpu


_PACKED_ORDER = ("wlr_a", "blr_a", "wlr_v", "w_aout", "b_aout", "w_vout")


def _scal_vec_products_kernel(a_ref, v_ref,
                              wlr_a_ref, blr_a_ref, wlr_v_ref,
                              w_aout_ref, b_aout_ref, w_vout_ref,
                              a_out_ref, v_out_ref):
    f32 = jnp.float32
    rank = wlr_a_ref.shape[0] // 2

    # ---- fused left|right scalar projection: one (2R, adim) x (adim, T) dot.
    a = a_ref[...].astype(f32)                                        # (adim, T)
    alr = (jnp.dot(wlr_a_ref[...].astype(f32), a, preferred_element_type=f32)
           + blr_a_ref[...].astype(f32))                              # (2R, T)
    a_left, a_right = alr[:rank], alr[rank:]                          # (R, T) each

    # ---- fused left|right vector projection, one dot per direction component.
    wlr_v = wlr_v_ref[...].astype(f32)                                # (2R, vdim)
    vlr_x = jnp.dot(wlr_v, v_ref[0].astype(f32), preferred_element_type=f32)
    vlr_y = jnp.dot(wlr_v, v_ref[1].astype(f32), preferred_element_type=f32)
    vlr_z = jnp.dot(wlr_v, v_ref[2].astype(f32), preferred_element_type=f32)
    vlx, vrx = vlr_x[:rank], vlr_x[rank:]
    vly, vry = vlr_y[:rank], vlr_y[rank:]
    vlz, vrz = vlr_z[:rank], vlr_z[rank:]

    # ---- normalized products; every tile is lane-dense (R, T).
    a_l_sq = a_left * a_left
    a_r_sq = a_right * a_right
    v_l_sq = vlx * vlx + vly * vly + vlz * vlz
    v_r_sq = vrx * vrx + vry * vry + vrz * vrz

    inv_aa = lax.rsqrt(1.0 + a_l_sq + a_r_sq)        # EUP rsqrt
    inv_vv = lax.rsqrt(1.0 + v_l_sq + v_r_sq)
    inv_av = lax.rsqrt(1.0 + a_l_sq + v_r_sq)

    aa_a = a_left * a_right * inv_aa                                  # (R, T)
    vv_a = (vlx * vrx + vly * vry + vlz * vrz) * inv_vv               # (R, T)

    # ---- fused scalar output: [W_aa | W_vva] @ [aa_a ; vv_a] + (b_aa + b_vva).
    s_a = jnp.concatenate([aa_a, vv_a], axis=0)                       # (2R, T)
    a_out = (jnp.dot(w_aout_ref[...].astype(f32), s_a, preferred_element_type=f32)
             + b_aout_ref[...].astype(f32))                           # (adim, T)
    a_out_ref[...] = a_out.astype(a_out_ref.dtype)

    # ---- fused vector output: [W_av | W_vvv] @ [av_c ; cross_c] per component.
    al_av = a_left * inv_av
    w_vout = w_vout_ref[...].astype(f32)                              # (vdim, 2R)
    s_x = jnp.concatenate([al_av * vrx, (vly * vrz - vlz * vry) * inv_vv], axis=0)
    s_y = jnp.concatenate([al_av * vry, (vlz * vrx - vlx * vrz) * inv_vv], axis=0)
    s_z = jnp.concatenate([al_av * vrz, (vlx * vry - vly * vrx) * inv_vv], axis=0)
    v_out_ref[0] = jnp.dot(w_vout, s_x, preferred_element_type=f32).astype(v_out_ref.dtype)
    v_out_ref[1] = jnp.dot(w_vout, s_y, preferred_element_type=f32).astype(v_out_ref.dtype)
    v_out_ref[2] = jnp.dot(w_vout, s_z, preferred_element_type=f32).astype(v_out_ref.dtype)


def _round_up(x, m):
    return -(-x // m) * m


def _vmem_limit_bytes():
    """Generation-aware scoped-VMEM limit (v5e/v6e: 128 MiB phys, v7x: 64 MiB)."""
    cap = 64 * 1024 * 1024            # conservative (v7x-sized) fallback
    try:
        cap = int(pltpu.get_tpu_info().vmem_capacity_bytes)
    except Exception:
        pass
    # Leave headroom for compiler scratch + the double-buffered pipeline.
    return int(min(cap // 2, 48 * 1024 * 1024))


def _pick_tile_n(n_rows, adim, vdim, rank, itemsize, vmem_limit):
    """Tile along the lane (row) axis: big enough to amortize per-step overhead,
    small enough for the VMEM budget, and >= 4 blocks when rows allow (v7x 2 TCs)."""
    if n_rows <= 128:
        return n_rows                              # one block; last dim == full N
    # Streamed IO per column (a + 3 v components, in + out), double-buffered.
    io_bytes = 4 * (adim + 3 * vdim) * itemsize
    # Generous bound on live f32 intermediates per column inside the kernel.
    tmp_bytes = (40 * rank + adim + 3 * vdim) * 4
    tile = (vmem_limit // 2) // max(1, io_bytes + tmp_bytes)
    tile = max(128, min(8192, (tile // 128) * 128))
    if n_rows >= 512:
        # Keep >= 4 parallel blocks so both v7x TensorCores (and the pipeline) stay busy.
        tile = min(tile, _round_up(-(-n_rows // 4), 128))
    # Never let a block exceed the array: cap at the largest 128-multiple <= N;
    # the ragged remainder is handled by the cdiv grid + masked writeback.
    tile = min(tile, max(128, (n_rows // 128) * 128))
    return tile


def _const_spec(arr):
    ndim = arr.ndim
    return pl.BlockSpec(arr.shape, lambda i, _nd=ndim: (0,) * _nd)


def scal_vec_products(a, v, packed, *, tile_n=None, interpret=False):
    """a: (..., adim), v: (..., vdim, 3) -> (a_out, v_out) like the PyTorch module."""
    adim = a.shape[-1]
    vdim = v.shape[-2]
    assert v.shape[-1] == 3, "vector axis must have length 3"
    batch_shape = a.shape[:-1]
    assert v.shape[:-2] == batch_shape, "a and v must share leading dims"
    rank = packed["wlr_a"].shape[0] // 2

    n_rows = 1
    for s in batch_shape:
        n_rows *= int(s)

    # Feature-major slabs: rows on the 128-lane axis, features on sublanes.
    a_fm = a.reshape(n_rows, adim).T                                  # (adim, N)
    v_fm = jnp.transpose(v.reshape(n_rows, vdim, 3), (2, 1, 0))       # (3, vdim, N)

    vmem_limit = _vmem_limit_bytes()
    if tile_n is None:
        tile_n = _pick_tile_n(n_rows, adim, vdim, rank, a.dtype.itemsize, vmem_limit)
    tile_n = int(tile_n)

    grid = (pl.cdiv(n_rows, tile_n),)

    in_specs = [
        pl.BlockSpec((adim, tile_n), lambda i: (0, i)),
        pl.BlockSpec((3, vdim, tile_n), lambda i: (0, 0, i)),
    ] + [_const_spec(packed[k]) for k in _PACKED_ORDER]

    out_specs = [
        pl.BlockSpec((adim, tile_n), lambda i: (0, i)),
        pl.BlockSpec((3, vdim, tile_n), lambda i: (0, 0, i)),
    ]

    out_shape = (
        jax.ShapeDtypeStruct((adim, n_rows), a.dtype),
        jax.ShapeDtypeStruct((3, vdim, n_rows), v.dtype),
    )

    a_out_fm, v_out_fm = pl.pallas_call(
        _scal_vec_products_kernel,
        out_shape=out_shape,
        grid=grid,
        in_specs=in_specs,
        out_specs=out_specs,
        compiler_params=pltpu.CompilerParams(
            dimension_semantics=("parallel",),
            vmem_limit_bytes=vmem_limit,
        ),
        interpret=interpret,
    )(a_fm, v_fm, *[packed[k] for k in _PACKED_ORDER])

    a_out = a_out_fm.T.reshape(*batch_shape, adim)
    v_out = jnp.transpose(v_out_fm, (2, 1, 0)).reshape(*batch_shape, vdim, 3)
    return a_out, v_out


def init_params(key, adim, vdim, rank, dtype=jnp.float32):
    """PyTorch-layout parameters: nn.Linear W:(out,in), b:(out,) ~ U(+-1/sqrt(fan_in));
    VecLinear.self_init W:(out,in) ~ N(0, fan_in**-1)."""
    ks = jax.random.split(key, 12)

    def linear(kw, kb, din, dout):
        bound = 1.0 / (din ** 0.5)
        w = jax.random.uniform(kw, (dout, din), dtype, -bound, bound)
        b = jax.random.uniform(kb, (dout,), dtype, -bound, bound)
        return w, b

    def veclinear(k, din, dout):
        return (jax.random.normal(k, (dout, din)) * (din ** -0.5)).astype(dtype)

    p = {}
    p["W_la"], p["b_la"] = linear(ks[0], ks[1], adim, rank)
    p["W_ra"], p["b_ra"] = linear(ks[2], ks[3], adim, rank)
    p["W_lv"] = veclinear(ks[4], vdim, rank)
    p["W_rv"] = veclinear(ks[5], vdim, rank)
    p["W_aa"], p["b_aa"] = linear(ks[6], ks[7], rank, adim)
    p["W_vva"], p["b_vva"] = linear(ks[8], ks[9], rank, adim)
    p["W_av"] = veclinear(ks[10], rank, vdim)
    p["W_vvv"] = veclinear(ks[11], rank, vdim)
    return p


def pack_params(p):
    """One-time fusion of the 12 per-layer tensors into 6 kernel operands
    (mathematically identical to the unfused module)."""
    return {
        "wlr_a": jnp.concatenate([p["W_la"], p["W_ra"]], axis=0),           # (2R, adim)
        "blr_a": jnp.concatenate([p["b_la"], p["b_ra"]], axis=0)[:, None],  # (2R, 1)
        "wlr_v": jnp.concatenate([p["W_lv"], p["W_rv"]], axis=0),           # (2R, vdim)
        "w_aout": jnp.concatenate([p["W_aa"], p["W_vva"]], axis=1),         # (adim, 2R)
        "b_aout": (p["b_aa"] + p["b_vva"])[:, None],                        # (adim, 1)
        "w_vout": jnp.concatenate([p["W_av"], p["W_vvv"]], axis=1),         # (vdim, 2R)
    }


def _reference(a, v, p):
    """Pure-JAX transcription of the PyTorch forward (unfused parameters)."""
    a_left = jnp.dot(a, p["W_la"].T) + p["b_la"]
    a_right = jnp.dot(a, p["W_ra"].T) + p["b_ra"]
    v_left = jnp.einsum("oi,...ik->...ok", p["W_lv"], v)
    v_right = jnp.einsum("oi,...ik->...ok", p["W_rv"], v)

    a_left_sq, a_right_sq = a_left ** 2, a_right ** 2
    v_left_sq = (v_left ** 2).sum(-1)
    v_right_sq = (v_right ** 2).sum(-1)

    aa_a = a_left * a_right / jnp.sqrt(1.0 + a_left_sq + a_right_sq)
    vv_a = (v_left * v_right).sum(-1) / jnp.sqrt(1.0 + v_left_sq + v_right_sq)
    av_v = a_left[..., None] * v_right / jnp.sqrt(1.0 + a_left_sq + v_right_sq)[..., None]
    vv_v = jnp.cross(v_left, v_right) / jnp.sqrt(1.0 + v_left_sq + v_right_sq)[..., None]

    a_out = (jnp.dot(aa_a, p["W_aa"].T) + p["b_aa"]
             + jnp.dot(vv_a, p["W_vva"].T) + p["b_vva"])
    v_out = (jnp.einsum("oi,...ik->...ok", p["W_av"], av_v)
             + jnp.einsum("oi,...ik->...ok", p["W_vvv"], vv_v))
    return a_out, v_out


if __name__ == "__main__":
    key = jax.random.PRNGKey(0)
    ka, kv, kp, ka2, kv2 = jax.random.split(key, 5)

    adim, vdim, rank = 32, 16, 8
    params = init_params(kp, adim, vdim, rank)
    packed = pack_params(params)

    # Small case (single block; lane dim equals the full row count).
    batch, nodes = 2, 8
    a = jax.random.normal(ka, (batch, nodes, adim), dtype=jnp.float32)
    v = jax.random.normal(kv, (batch, nodes, vdim, 3), dtype=jnp.float32)
    a_out, v_out = jax.block_until_ready(scal_vec_products(a, v, packed))
    a_ref, v_ref = _reference(a, v, params)
    assert a_out.shape == (batch, nodes, adim) and a_out.dtype == a.dtype
    assert v_out.shape == (batch, nodes, vdim, 3) and v_out.dtype == v.dtype
    assert jnp.allclose(a_out, a_ref, atol=1e-2, rtol=1e-2), "a_out mismatch (small)"
    assert jnp.allclose(v_out, v_ref, atol=1e-2, rtol=1e-2), "v_out mismatch (small)"

    # Multi-block case (512 rows -> 4 parallel 128-column blocks).
    batch2, nodes2 = 4, 128
    a2 = jax.random.normal(ka2, (batch2, nodes2, adim), dtype=jnp.float32)
    v2 = jax.random.normal(kv2, (batch2, nodes2, vdim, 3), dtype=jnp.float32)
    a_out2, v_out2 = jax.block_until_ready(scal_vec_products(a2, v2, packed))
    a_ref2, v_ref2 = _reference(a2, v2, params)
    assert jnp.allclose(a_out2, a_ref2, atol=1e-2, rtol=1e-2), "a_out mismatch (tiled)"
    assert jnp.allclose(v_out2, v_ref2, atol=1e-2, rtol=1e-2), "v_out mismatch (tiled)"

    print("KERNEL_OK")
</pallas_src>

<mosaic_0001>
module attributes {stable_mosaic.version = 11 : i64} {
  func.func @_scal_vec_products_kernel(%arg0: i32, %arg1: memref<32x16xf32, #tpu.memory_space<vmem>>, %arg2: memref<3x16x16xf32, #tpu.memory_space<vmem>>, %arg3: memref<16x32xf32, #tpu.memory_space<vmem>>, %arg4: memref<16x1xf32, #tpu.memory_space<vmem>>, %arg5: memref<16x16xf32, #tpu.memory_space<vmem>>, %arg6: memref<32x16xf32, #tpu.memory_space<vmem>>, %arg7: memref<32x1xf32, #tpu.memory_space<vmem>>, %arg8: memref<16x16xf32, #tpu.memory_space<vmem>>, %arg9: memref<32x16xf32, #tpu.memory_space<vmem>>, %arg10: memref<3x16x16xf32, #tpu.memory_space<vmem>>) attributes {dimension_semantics = [#tpu.dimension_semantics<parallel>], iteration_bounds = array<i64: 1>, scalar_prefetch = 0 : i64, scratch_operands = 0 : i64, tpu.core_type = #tpu.core_type<tc>, window_params = [{transform_indices = @transform_0, window_bounds = array<i64: 32, 16>}, {transform_indices = @transform_1, window_bounds = array<i64: 3, 16, 16>}, {pipeline_mode = #tpu.pipeline_mode<synchronous>, transform_indices = @transform_2, window_bounds = array<i64: 16, 32>}, {pipeline_mode = #tpu.pipeline_mode<synchronous>, transform_indices = @transform_3, window_bounds = array<i64: 16, 1>}, {pipeline_mode = #tpu.pipeline_mode<synchronous>, transform_indices = @transform_4, window_bounds = array<i64: 16, 16>}, {pipeline_mode = #tpu.pipeline_mode<synchronous>, transform_indices = @transform_5, window_bounds = array<i64: 32, 16>}, {pipeline_mode = #tpu.pipeline_mode<synchronous>, transform_indices = @transform_6, window_bounds = array<i64: 32, 1>}, {pipeline_mode = #tpu.pipeline_mode<synchronous>, transform_indices = @transform_7, window_bounds = array<i64: 16, 16>}, {transform_indices = @transform_8, window_bounds = array<i64: 32, 16>}, {transform_indices = @transform_9, window_bounds = array<i64: 3, 16, 16>}]} {
    %c0 = arith.constant 0 : index
    %c0_0 = arith.constant 0 : index
    %0 = vector.load %arg1[%c0, %c0_0] : memref<32x16xf32, #tpu.memory_space<vmem>>, vector<32x16xf32>
    %c0_1 = arith.constant 0 : index
    %c0_2 = arith.constant 0 : index
    %1 = vector.load %arg3[%c0_1, %c0_2] : memref<16x32xf32, #tpu.memory_space<vmem>>, vector<16x32xf32>
    %cst = arith.constant dense<0.000000e+00> : vector<16x16xf32>
    %2 = tpu.matmul %1, %0, %cst {dimension_numbers = #tpu.dot_dimension_numbers<[1], [0], [0], [1], [0, 0, 1, 1], [], []>} : vector<16x32xf32>, vector<32x16xf32>, vector<16x16xf32> -> vector<16x16xf32>
    %c0_3 = arith.constant 0 : index
    %c0_4 = arith.constant 0 : index
    %3 = vector.load %arg4[%c0_3, %c0_4] : memref<16x1xf32, #tpu.memory_space<vmem>>, vector<16x1xf32>
    %4 = vector.broadcast %3 : vector<16x1xf32> to vector<16x16xf32>
    %5 = arith.addf %2, %4 : vector<16x16xf32>
    %6 = vector.extract_strided_slice %5 {offsets = [0, 0], sizes = [8, 16], strides = [1, 1]} : vector<16x16xf32> to vector<8x16xf32>
    %7 = vector.extract_strided_slice %5 {offsets = [8, 0], sizes = [8, 16], strides = [1, 1]} : vector<16x16xf32> to vector<8x16xf32>
    %c0_5 = arith.constant 0 : index
    %c0_6 = arith.constant 0 : index
    %8 = vector.load %arg5[%c0_5, %c0_6] : memref<16x16xf32, #tpu.memory_space<vmem>>, vector<16x16xf32>
    %c0_7 = arith.constant 0 : index
    %c0_8 = arith.constant 0 : index
    %c0_9 = arith.constant 0 : index
    %9 = vector.load %arg2[%c0_7, %c0_8, %c0_9] : memref<3x16x16xf32, #tpu.memory_space<vmem>>, vector<1x16x16xf32>
    %10 = vector.shape_cast %9 : vector<1x16x16xf32> to vector<16x16xf32>
    %cst_10 = arith.constant dense<0.000000e+00> : vector<16x16xf32>
    %11 = tpu.matmul %8, %10, %cst_10 {dimension_numbers = #tpu.dot_dimension_numbers<[1], [0], [0], [1], [0, 0, 1, 1], [], []>} : vector<16x16xf32>, vector<16x16xf32>, vector<16x16xf32> -> vector<16x16xf32>
    %c1 = arith.constant 1 : index
    %c0_11 = arith.constant 0 : index
    %c0_12 = arith.constant 0 : index
    %12 = vector.load %arg2[%c1, %c0_11, %c0_12] : memref<3x16x16xf32, #tpu.memory_space<vmem>>, vector<1x16x16xf32>
    %13 = vector.shape_cast %12 : vector<1x16x16xf32> to vector<16x16xf32>
    %cst_13 = arith.constant dense<0.000000e+00> : vector<16x16xf32>
    %14 = tpu.matmul %8, %13, %cst_13 {dimension_numbers = #tpu.dot_dimension_numbers<[1], [0], [0], [1], [0, 0, 1, 1], [], []>} : vector<16x16xf32>, vector<16x16xf32>, vector<16x16xf32> -> vector<16x16xf32>
    %c2 = arith.constant 2 : index
    %c0_14 = arith.constant 0 : index
    %c0_15 = arith.constant 0 : index
    %15 = vector.load %arg2[%c2, %c0_14, %c0_15] : memref<3x16x16xf32, #tpu.memory_space<vmem>>, vector<1x16x16xf32>
    %16 = vector.shape_cast %15 : vector<1x16x16xf32> to vector<16x16xf32>
    %cst_16 = arith.constant dense<0.000000e+00> : vector<16x16xf32>
    %17 = tpu.matmul %8, %16, %cst_16 {dimension_numbers = #tpu.dot_dimension_numbers<[1], [0], [0], [1], [0, 0, 1, 1], [], []>} : vector<16x16xf32>, vector<16x16xf32>, vector<16x16xf32> -> vector<16x16xf32>
    %18 = vector.extract_strided_slice %11 {offsets = [0, 0], sizes = [8, 16], strides = [1, 1]} : vector<16x16xf32> to vector<8x16xf32>
    %19 = vector.extract_strided_slice %11 {offsets = [8, 0], sizes = [8, 16], strides = [1, 1]} : vector<16x16xf32> to vector<8x16xf32>
    %20 = vector.extract_strided_slice %14 {offsets = [0, 0], sizes = [8, 16], strides = [1, 1]} : vector<16x16xf32> to vector<8x16xf32>
    %21 = vector.extract_strided_slice %14 {offsets = [8, 0], sizes = [8, 16], strides = [1, 1]} : vector<16x16xf32> to vector<8x16xf32>
    %22 = vector.extract_strided_slice %17 {offsets = [0, 0], sizes = [8, 16], strides = [1, 1]} : vector<16x16xf32> to vector<8x16xf32>
    %23 = vector.extract_strided_slice %17 {offsets = [8, 0], sizes = [8, 16], strides = [1, 1]} : vector<16x16xf32> to vector<8x16xf32>
    %24 = arith.mulf %6, %6 : vector<8x16xf32>
    %25 = arith.mulf %7, %7 : vector<8x16xf32>
    %26 = arith.mulf %18, %18 : vector<8x16xf32>
    %27 = arith.mulf %20, %20 : vector<8x16xf32>
    %28 = arith.addf %26, %27 : vector<8x16xf32>
    %29 = arith.mulf %22, %22 : vector<8x16xf32>
    %30 = arith.addf %28, %29 : vector<8x16xf32>
    %31 = arith.mulf %19, %19 : vector<8x16xf32>
    %32 = arith.mulf %21, %21 : vector<8x16xf32>
    %33 = arith.addf %31, %32 : vector<8x16xf32>
    %34 = arith.mulf %23, %23 : vector<8x16xf32>
    %35 = arith.addf %33, %34 : vector<8x16xf32>
    %cst_17 = arith.constant 1.000000e+00 : f32
    %36 = vector.broadcast %cst_17 : f32 to vector<8x16xf32>
    %37 = arith.addf %36, %24 : vector<8x16xf32>
    %38 = arith.addf %37, %25 : vector<8x16xf32>
    %39 = math.rsqrt %38 : vector<8x16xf32>
    %cst_18 = arith.constant 1.000000e+00 : f32
    %40 = vector.broadcast %cst_18 : f32 to vector<8x16xf32>
    %41 = arith.addf %40, %30 : vector<8x16xf32>
    %42 = arith.addf %41, %35 : vector<8x16xf32>
    %43 = math.rsqrt %42 : vector<8x16xf32>
    %cst_19 = arith.constant 1.000000e+00 : f32
    %44 = vector.broadcast %cst_19 : f32 to vector<8x16xf32>
    %45 = arith.addf %44, %24 : vector<8x16xf32>
    %46 = arith.addf %45, %35 : vector<8x16xf32>
    %47 = math.rsqrt %46 : vector<8x16xf32>
    %48 = arith.mulf %6, %7 : vector<8x16xf32>
    %49 = arith.mulf %48, %39 : vector<8x16xf32>
    %50 = arith.mulf %18, %19 : vector<8x16xf32>
    %51 = arith.mulf %20, %21 : vector<8x16xf32>
    %52 = arith.addf %50, %51 : vector<8x16xf32>
    %53 = arith.mulf %22, %23 : vector<8x16xf32>
    %54 = arith.addf %52, %53 : vector<8x16xf32>
    %55 = arith.mulf %54, %43 : vector<8x16xf32>
    %56 = tpu.concatenate %49, %55 in 0 : vector<8x16xf32>, vector<8x16xf32> -> vector<16x16xf32>
    %c0_20 = arith.constant 0 : index
    %c0_21 = arith.constant 0 : index
    %57 = vector.load %arg6[%c0_20, %c0_21] : memref<32x16xf32, #tpu.memory_space<vmem>>, vector<32x16xf32>
    %cst_22 = arith.constant dense<0.000000e+00> : vector<32x16xf32>
    %58 = tpu.matmul %57, %56, %cst_22 {dimension_numbers = #tpu.dot_dimension_numbers<[1], [0], [0], [1], [0, 0, 1, 1], [], []>} : vector<32x16xf32>, vector<16x16xf32>, vector<32x16xf32> -> vector<32x16xf32>
    %c0_23 = arith.constant 0 : index
    %c0_24 = arith.constant 0 : index
    %59 = vector.load %arg7[%c0_23, %c0_24] : memref<32x1xf32, #tpu.memory_space<vmem>>, vector<32x1xf32>
    %60 = vector.broadcast %59 : vector<32x1xf32> to vector<32x16xf32>
    %61 = arith.addf %58, %60 : vector<32x16xf32>
    %c0_25 = arith.constant 0 : index
    %c0_26 = arith.constant 0 : index
    %62 = vector.load %arg9[%c0_25, %c0_26] : memref<32x16xf32, #tpu.memory_space<vmem>>, vector<32x16xf32>
    tpu.vector_store %arg9[%c0_25, %c0_26], %61 {strides = array<i32>} : memref<32x16xf32, #tpu.memory_space<vmem>>, vector<32x16xf32>,
    %63 = arith.mulf %6, %47 : vector<8x16xf32>
    %c0_27 = arith.constant 0 : index
    %c0_28 = arith.constant 0 : index
    %64 = vector.load %arg8[%c0_27, %c0_28] : memref<16x16xf32, #tpu.memory_space<vmem>>, vector<16x16xf32>
    %65 = arith.mulf %63, %19 : vector<8x16xf32>
    %66 = arith.mulf %20, %23 : vector<8x16xf32>
    %67 = arith.mulf %22, %21 : vector<8x16xf32>
    %68 = arith.subf %66, %67 : vector<8x16xf32>
    %69 = arith.mulf %68, %43 : vector<8x16xf32>
    %70 = tpu.concatenate %65, %69 in 0 : vector<8x16xf32>, vector<8x16xf32> -> vector<16x16xf32>
    %71 = arith.mulf %63, %21 : vector<8x16xf32>
    %72 = arith.mulf %22, %19 : vector<8x16xf32>
    %73 = arith.mulf %18, %23 : vector<8x16xf32>
    %74 = arith.subf %72, %73 : vector<8x16xf32>
    %75 = arith.mulf %74, %43 : vector<8x16xf32>
    %76 = tpu.concatenate %71, %75 in 0 : vector<8x16xf32>, vector<8x16xf32> -> vector<16x16xf32>
    %77 = arith.mulf %63, %23 : vector<8x16xf32>
    %78 = arith.mulf %18, %21 : vector<8x16xf32>
    %79 = arith.mulf %20, %19 : vector<8x16xf32>
    %80 = arith.subf %78, %79 : vector<8x16xf32>
    %81 = arith.mulf %80, %43 : vector<8x16xf32>
    %82 = tpu.concatenate %77, %81 in 0 : vector<8x16xf32>, vector<8x16xf32> -> vector<16x16xf32>
    %cst_29 = arith.constant dense<0.000000e+00> : vector<16x16xf32>
    %83 = tpu.matmul %64, %70, %cst_29 {dimension_numbers = #tpu.dot_dimension_numbers<[1], [0], [0], [1], [0, 0, 1, 1], [], []>} : vector<16x16xf32>, vector<16x16xf32>, vector<16x16xf32> -> vector<16x16xf32>
    %c0_30 = arith.constant 0 : index
    %c0_31 = arith.constant 0 : index
    %c0_32 = arith.constant 0 : index
    %84 = vector.load %arg10[%c0_30, %c0_31, %c0_32] : memref<3x16x16xf32, #tpu.memory_space<vmem>>, vector<1x16x16xf32>
    %85 = vector.shape_cast %84 : vector<1x16x16xf32> to vector<16x16xf32>
    %86 = vector.shape_cast %83 : vector<16x16xf32> to vector<1x16x16xf32>
    tpu.vector_store %arg10[%c0_30, %c0_31, %c0_32], %86 {strides = array<i32>} : memref<3x16x16xf32, #tpu.memory_space<vmem>>, vector<1x16x16xf32>,
    %cst_33 = arith.constant dense<0.000000e+00> : vector<16x16xf32>
    %87 = tpu.matmul %64, %76, %cst_33 {dimension_numbers = #tpu.dot_dimension_numbers<[1], [0], [0], [1], [0, 0, 1, 1], [], []>} : vector<16x16xf32>, vector<16x16xf32>, vector<16x16xf32> -> vector<16x16xf32>
    %c1_34 = arith.constant 1 : index
    %c0_35 = arith.constant 0 : index
    %c0_36 = arith.constant 0 : index
    %88 = vector.load %arg10[%c1_34, %c0_35, %c0_36] : memref<3x16x16xf32, #tpu.memory_space<vmem>>, vector<1x16x16xf32>
    %89 = vector.shape_cast %88 : vector<1x16x16xf32> to vector<16x16xf32>
    %90 = vector.shape_cast %87 : vector<16x16xf32> to vector<1x16x16xf32>
    tpu.vector_store %arg10[%c1_34, %c0_35, %c0_36], %90 {strides = array<i32>} : memref<3x16x16xf32, #tpu.memory_space<vmem>>, vector<1x16x16xf32>,
    %cst_37 = arith.constant dense<0.000000e+00> : vector<16x16xf32>
    %91 = tpu.matmul %64, %82, %cst_37 {dimension_numbers = #tpu.dot_dimension_numbers<[1], [0], [0], [1], [0, 0, 1, 1], [], []>} : vector<16x16xf32>, vector<16x16xf32>, vector<16x16xf32> -> vector<16x16xf32>
    %c2_38 = arith.constant 2 : index
    %c0_39 = arith.constant 0 : index
    %c0_40 = arith.constant 0 : index
    %92 = vector.load %arg10[%c2_38, %c0_39, %c0_40] : memref<3x16x16xf32, #tpu.memory_space<vmem>>, vector<1x16x16xf32>
    %93 = vector.shape_cast %92 : vector<1x16x16xf32> to vector<16x16xf32>
    %94 = vector.shape_cast %91 : vector<16x16xf32> to vector<1x16x16xf32>
    tpu.vector_store %arg10[%c2_38, %c0_39, %c0_40], %94 {strides = array<i32>} : memref<3x16x16xf32, #tpu.memory_space<vmem>>, vector<1x16x16xf32>,
    return
  }
  func.func @transform_0(%arg0: i32) -> (i32, i32) {
    %c0_i32 = arith.constant 0 : i32
    %c0_i32_0 = arith.constant 0 : i32
    return %c0_i32, %arg0 : i32, i32
  }
  func.func @transform_1(%arg0: i32) -> (i32, i32, i32) {
    %c0_i32 = arith.constant 0 : i32
    %c0_i32_0 = arith.constant 0 : i32
    %c0_i32_1 = arith.constant 0 : i32
    return %c0_i32, %c0_i32_0, %arg0 : i32, i32, i32
  }
  func.func @transform_2(%arg0: i32) -> (i32, i32) {
    %c0_i32 = arith.constant 0 : i32
    %c0_i32_0 = arith.constant 0 : i32
    %c0_i32_1 = arith.constant 0 : i32
    return %c0_i32, %c0_i32_0 : i32, i32
  }
  func.func @transform_3(%arg0: i32) -> (i32, i32) {
    %c0_i32 = arith.constant 0 : i32
    %c0_i32_0 = arith.constant 0 : i32
    %c0_i32_1 = arith.constant 0 : i32
    return %c0_i32, %c0_i32_0 : i32, i32
  }
  func.func @transform_4(%arg0: i32) -> (i32, i32) {
    %c0_i32 = arith.constant 0 : i32
    %c0_i32_0 = arith.constant 0 : i32
    %c0_i32_1 = arith.constant 0 : i32
    return %c0_i32, %c0_i32_0 : i32, i32
  }
  func.func @transform_5(%arg0: i32) -> (i32, i32) {
    %c0_i32 = arith.constant 0 : i32
    %c0_i32_0 = arith.constant 0 : i32
    %c0_i32_1 = arith.constant 0 : i32
    return %c0_i32, %c0_i32_0 : i32, i32
  }
  func.func @transform_6(%arg0: i32) -> (i32, i32) {
    %c0_i32 = arith.constant 0 : i32
    %c0_i32_0 = arith.constant 0 : i32
    %c0_i32_1 = arith.constant 0 : i32
    return %c0_i32, %c0_i32_0 : i32, i32
  }
  func.func @transform_7(%arg0: i32) -> (i32, i32) {
    %c0_i32 = arith.constant 0 : i32
    %c0_i32_0 = arith.constant 0 : i32
    %c0_i32_1 = arith.constant 0 : i32
    return %c0_i32, %c0_i32_0 : i32, i32
  }
  func.func @transform_8(%arg0: i32) -> (i32, i32) {
    %c0_i32 = arith.constant 0 : i32
    %c0_i32_0 = arith.constant 0 : i32
    return %c0_i32, %arg0 : i32, i32
  }
  func.func @transform_9(%arg0: i32) -> (i32, i32, i32) {
    %c0_i32 = arith.constant 0 : i32
    %c0_i32_0 = arith.constant 0 : i32
    %c0_i32_1 = arith.constant 0 : i32
    return %c0_i32, %c0_i32_0, %arg0 : i32, i32, i32
  }
}

</mosaic_0001>

<bundles_post_ra>
// kernel: tpu_custom_call.1
= control target key start
LH: loop header
LB: loop body
LE: loop exit
PB: predicated region body
PF: predicated region fallthrough
CT: control target
= control target key end

     0   :  { %vm84_vm0 = vcmask 130048   ;;  %vm50_vm1 = vcmask 261120   ;;  %s703_s0 = inlined_call_operand.vmem [shape: f32[32,16], index: 0, kind: input, shape index: {}]   ;;  %s704_s1 = inlined_call_operand.vmem [shape: f32[3,16,16], index: 1, kind: input, shape index: {}]   ;;  %s705_s2 = inlined_call_operand.vmem [shape: f32[16,32], index: 2, kind: input, shape index: {}]   ;;  %s706_s3 = inlined_call_operand.vmem [shape: f32[16,1], index: 3, kind: input, shape index: {}]   ;;  %s707_s4 = inlined_call_operand.vmem [shape: f32[16,16], index: 4, kind: input, shape index: {}]   ;;  %s708_s5 = inlined_call_operand.vmem [shape: f32[32,16], index: 5, kind: input, shape index: {}]   ;;  %s709_s6 = inlined_call_operand.vmem [shape: f32[32,1], index: 6, kind: input, shape index: {}]   ;;  %s710_s7 = inlined_call_operand.vmem [shape: f32[16,16], index: 7, kind: input, shape index: {}]   ;;  %s711_s8 = inlined_call_operand.vmem [shape: f32[32,16], index: 8, kind: output, shape index: {0}]   ;;  %s712_s9 = inlined_call_operand.hbm [shape: f32[3,16,16], index: 9, kind: output, shape index: {1}]  }
   0x1   :  { %v35_v0 = vld [vmem:[%s703_s0 + $0x18] sm:$0xff]  ;;  %v83_v1 = vld [vmem:[%s704_s1 + $0x8] sm:$0xff]  ;;  %v34_v3 = vld [vmem:[%s703_s0 + $0x10] sm:$0xff] }
   0x2   :  { %v426_v2 = vld [vmem:[%s704_s1 + $0x28] sm:$0xff]  ;;  %69 = vmatpush.msra.mxu0 %v35_v0  ;;  %439 = vmatpush.msra.mxu2 %v83_v1  ;;  %v82_v4 = vld [vmem:[%s704_s1] sm:$0xff]  ;;  %v422_v9 = vld [vmem:[%s704_s1 + $0x18] sm:$0xff] }
   0x3   :  { %v425_v5 = vld [vmem:[%s704_s1 + $0x20] sm:$0xff]  ;;  %157 = vmatpush.msra.mxu3 %v426_v2  ;;  %v81_v6 = vld [vmem:[%s707_s4 + $0x8] sm:$0xff]  ;;  %105 = vmatpush.msra.mxu1 %v83_v1  ;;  %v421_v12 = vld [vmem:[%s704_s1 + $0x10] sm:$0xff] }
   0x4   :  { %v80_v7 = vld [vmem:[%s707_s4] sm:$0xff]  ;;  %v33_v8 = vld [vmem:[%s703_s0 + $0x8] sm:$0xff]  ;;  %70 = vmatpush.msra.mxu0 %v34_v3  ;;  %440 = vmatpush.msra.mxu2 %v82_v4 }
   0x5   :  { %158 = vmatpush.msra.mxu3 %v425_v5  ;;  %420 = vmatmul.msk.f32.vlgmr.msra.gmra.mxu2 %vm84_vm0, %v81_v6  ;;  %v32_v10 = vld [vmem:[%s703_s0] sm:$0xff] }
   0x6   :  { %427 = vmatmul.msk.f32.vlgmr.msra.gmra.mxu3 %vm84_vm0, %v80_v7  ;;  %71 = vmatpush.msra.mxu0 %v33_v8  ;;  %v36_v11 = vld [vmem:[%s705_s2] sm:$0xff] }
   0x7   :  { %15 = vsyncpa [#allocation3], 0  ;;  %106 = vmatpush.msra.mxu1 %v82_v4  ;;  %131 = vmatpush.msrb.mxu2 %v422_v9  ;;  %v38_v13 = vld [vmem:[%s706_s3] sm:$0xff]  ;;  %v480_v14 = vmov 0   ;;  %v37_v15 = vld [vmem:[%s705_s2 + $0x8] sm:$0xff]  ;;  %s403_s14 = sshll.u32 %s712_s9, 4  ;;  %s404_s14 = int_to_ptr.hbm [resolvable:$true] %s403_s14 }
   0x8   :  { %72 = vmatpush.msra.mxu0 %v32_v10  ;;  %419 = vmatmul.msk.f32.vlgmr.msra.gmra.mxu1 %vm84_vm0, %v80_v7  ;;  %v39_v16 = vld [vmem:[%s706_s3 + $0x8] sm:$0xff]  ;;  %v225_v48 = vld [vmem:[%s709_s6] sm:$0xff]  ;;  %s482_s2 = smov 128   ;;  %s483_s3 = smov 8  }
   0x9   :  { %417 = vmatmul.msk.f32.vlgmr.msra.gmra.mxu0 %vm50_vm1, %v36_v11  ;;  %132 = vmatpush.msrb.mxu2 %v421_v12  ;;  %v226_v57 = vld [vmem:[%s709_s6 + $0x8] sm:$0xff] }
   0xa   :  { %445 = vset.pattern.permute.xlu0 %v480_v14  ;;  %446 = vset.pattern.permute.xlu1 %v480_v14 }
   0xb   :  { %42 = vperm.xlu0 %445, %v38_v13   ;;  %447 = vset.pattern.permute.xlu2 %v480_v14 }
   0xc   :  { %231 = vperm.xlu1 %446, %v225_v48  }
   0xd   :  { %423 = vmatmul.msk.f32.vlgmr.msrb.gmra.mxu2 %vm84_vm0, %v80_v7 }
   0xe   :  { %428 = vmatmul.msk.f32.gmra.mxu3 %vm84_vm0, %v81_v6 }
  0x11   :  { %418 = vmatmul.msk.f32.gmra.mxu0 %vm50_vm1, %v37_v15 }
  0x13   :  { %47 = vperm.xlu0 %445, %v39_v16  }
  0x14   :  { %236 = vperm.xlu1 %446, %v226_v57  }
  0x15   :  { %424 = vmatmul.msk.f32.gmra.mxu2 %vm84_vm0, %v81_v6 }
  0x7d   :  { %v43_v17 = vpop.permute.xlu0 %42 }
  0x85   :  { %v48_v22 = vpop.permute.xlu0 %47  ;;  %v108_v27 = vpop.f32.mrf.mxu1 }
  0x86   :  { %v74_v18 = vpop.f32.mrf.mxu0  ;;  %v168_v29 = vmul.f32 %v108_v27, %v108_v27 }
  0x87   :  { %v590_v19 = vadd.f32 %v74_v18, %v43_v17  ;;  %v227_v18 = vld [vmem:[%s709_s6 + $0x10] sm:$0xff] }
  0x88   :  { %v592_v20 = vpop.f32.mrf.mxu2  ;;  %241 = vperm.xlu2 %447, %v227_v18  }
  0x89   :  { %v166_v21 = vmul.f32 %v590_v19, %v590_v19  ;;  %v160_v23 = vpop.f32.mrf.mxu3  ;;  %v173_v37 = vmul.f32 %v592_v20, %v592_v20  ;;  %v215_v60 = vmul.f32 %v592_v20, %v108_v27 }
  0x8a   :  { %v171_v33 = vmul.f32 %v160_v23, %v160_v23  ;;  %v303_v61 = vmul.f32 %v160_v23, %v592_v20 }
  0x8b   :  { %v178_v25 = vadd.f32 1.0, %v166_v21 }
  0x8e   :  { %v77_v24 = vpop.f32.mrf.mxu0 }
  0x8f   :  { %v596_v26 = vadd.f32 %v77_v24, %v48_v22 }
  0x90   :  { %v134_v28 = vpop.f32.mrf.mxu2 }
  0x91   :  { %v167_v30 = vmul.f32 %v596_v26, %v596_v26  ;;  %v169_v31 = vmul.f32 %v134_v28, %v134_v28  ;;  %v600_v35 = vpop.f32.mrf.mxu3  ;;  %v309_v6 = vmul.f32 %v134_v28, %v592_v20  ;;  %v213_v21 = vmul.f32 %v596_v26, %v590_v19 }
  0x92   :  { %v176_v39 = vmul.f32 %v600_v35, %v600_v35  ;;  %v304_v62 = vmul.f32 %v600_v35, %v108_v27  ;;  %v298_v8 = vmul.f32 %v600_v35, %v134_v28  ;;  %v218_v9 = vmul.f32 %v600_v35, %v160_v23 }
  0x93   :  { %v179_v32 = vadd.f32 %v178_v25, %v167_v30  ;;  %v170_v34 = vadd.f32 %v169_v31, %v168_v29 }
  0x94   :  { %v305_v13 = vsub.f32 %v303_v61, %v304_v62 }
  0x95   :  { %448 = vrsqrt.f32 %v179_v32  ;;  %v172_v38 = vadd.f32 %v171_v33, %v170_v34  ;;  %vm186_vm2 = vweird.f32 %v179_v32  ;;  %v295_v33 = vld [vmem:[%s710_s7] sm:$0xff]  ;;  %v222_v34 = vld [vmem:[%s708_s5 + $0x8] sm:$0xff] }
  0x97   :  { %v190_v43 = vadd.f32 1.0, %v172_v38  ;;  %v232_v38 = vpop.permute.xlu1 %231 }
  0x98   :  { %v602_v36 = vpop.f32.mrf.mxu2 }
  0x99   :  { %v174_v40 = vmul.f32 %v602_v36, %v602_v36  ;;  %v216_v55 = vmul.f32 %v602_v36, %v134_v28  ;;  %v299_v0 = vmul.f32 %v160_v23, %v602_v36  ;;  %v308_v3 = vmul.f32 %v602_v36, %v108_v27 }
  0x9b   :  { %v175_v41 = vadd.f32 %v174_v40, %v173_v37  ;;  %v610_v42 = vpop.eup %448  ;;  %v217_v2 = vadd.f32 %v216_v55, %v215_v60  ;;  %v300_v15 = vsub.f32 %v298_v8, %v299_v0  ;;  %v310_v16 = vsub.f32 %v308_v3, %v309_v6  ;;  %v224_v37 = vld [vmem:[%s708_s5 + $0x18] sm:$0xff] }
  0x9c   :  { %v181_v45 = vmul.f32 %v610_v42, %v179_v32  ;;  %vm187_vm3 = vweird.f32 %v610_v42 }
  0x9d   :  { %v177_v44 = vadd.f32 %v176_v39, %v175_v41  ;;  %vm631_vm6 = vmor %vm186_vm2, %vm187_vm3  ;;  %v219_v14 = vadd.f32 %v218_v9, %v217_v2 }
  0x9e   :  { %v182_v49 = vmul.f32 %v610_v42, %v181_v45 }
  0x9f   :  { %v202_v46 = vadd.f32 %v178_v25, %v177_v44  ;;  %v191_v47 = vadd.f32 %v190_v43, %v177_v44 }
  0xa0   :  { %v183_v51 = vmul.f32 0.5, %v182_v49 }
  0xa1   :  { %450 = vrsqrt.f32 %v202_v46  ;;  %vm209_vm7 = vweird.f32 %v202_v46  ;;  %vm198_vm8 = vweird.f32 %v191_v47 }
  0xa2   :  { %452 = vrsqrt.f32 %v191_v47  ;;  %v184_v59 = vsub.f32 1.5, %v183_v51 }
  0xa4   :  { %v185_v7 = vmul.f32 %v610_v42, %v184_v59 }
  0xa6   :  { %v189_v23 = vsel %vm631_vm6, %v610_v42, %v185_v7  ;;  %v237_v42 = vpop.permute.xlu1 %236 }
  0xa7   :  { %v451_v50 = vpop.eup %450  ;;  %v214_v26 = vmul.f32 %v213_v21, %v189_v23 }
  0xa8   :  { %v453_v52 = vpop.eup %452  ;;  %v204_v53 = vmul.f32 %v451_v50, %v202_v46  ;;  %vm210_vm4 = vweird.f32 %v451_v50 }
  0xa9   :  { %v193_v54 = vmul.f32 %v453_v52, %v191_v47  ;;  %vm199_vm5 = vweird.f32 %v453_v52  ;;  %vm211_vm9 = vmor %vm209_vm7, %vm210_vm4 }
  0xaa   :  { %v205_v56 = vmul.f32 %v451_v50, %v204_v53  ;;  %vm200_vm10 = vmor %vm198_vm8, %vm199_vm5 }
  0xab   :  { %v194_v58 = vmul.f32 %v453_v52, %v193_v54 }
  0xac   :  { %v206_v63 = vmul.f32 0.5, %v205_v56 }
  0xad   :  { %v195_v1 = vmul.f32 0.5, %v194_v58 }
  0xae   :  { %v207_v4 = vsub.f32 1.5, %v206_v63 }
  0xaf   :  { %v196_v5 = vsub.f32 1.5, %v195_v1 }
  0xb0   :  { %v208_v11 = vmul.f32 %v451_v50, %v207_v4 }
  0xb1   :  { %v197_v12 = vmul.f32 %v453_v52, %v196_v5 }
  0xb2   :  { %v212_v17 = vsel %vm211_vm9, %v451_v50, %v208_v11 }
  0xb3   :  { %v201_v22 = vsel %vm200_vm10, %v453_v52, %v197_v12  ;;  %v294_v24 = vmul.f32 %v212_v17, %v590_v19  ;;  %v221_v19 = vld [vmem:[%s708_s5] sm:$0xff] }
  0xb4   :  { %v220_v25 = vmul.f32 %v219_v14, %v201_v22  ;;  %v301_v27 = vmul.f32 %v300_v15, %v201_v22  ;;  %v306_v28 = vmul.f32 %v305_v13, %v201_v22  ;;  %v311_v29 = vmul.f32 %v310_v16, %v201_v22 }
  0xb5   :  { %v297_v30 = vmul.f32 %v294_v24, %v592_v20  ;;  %v302_v31 = vmul.f32 %v294_v24, %v602_v36  ;;  %v307_v32 = vmul.f32 %v294_v24, %v600_v35  ;;  %v228_v20 = vld [vmem:[%s709_s6 + $0x18] sm:$0xff]  ;;  %v296_v35 = vld [vmem:[%s710_s7 + $0x8] sm:$0xff]  ;;  %v223_v36 = vld [vmem:[%s708_s5 + $0x10] sm:$0xff]  ;;  %s481_s5 = smov [#allocation2]  }
  0xb6   :  { %275 = vmatpush.msrb.mxu1 %v220_v25  ;;  %332 = vmatpush.msra.mxu2 %v301_v27  ;;  %s401_s13 = sshll.u32 %s481_s5, 4  ;;  %s402_s13 = int_to_ptr.vmem [resolvable:$true] %s401_s13 }
  0xb7   :  { %357 = vmatpush.msrb.mxu3 %v306_v28  ;;  %383 = vmatpush.msrb.mxu0 %v311_v29 }
  0xb8   :  { %276 = vmatpush.msrb.mxu1 %v214_v26  ;;  %333 = vmatpush.msra.mxu2 %v297_v30 }
  0xb9   :  { %358 = vmatpush.msrb.mxu3 %v302_v31  ;;  %384 = vmatpush.msrb.mxu0 %v307_v32 }
  0xba   :  { %429 = vmatmul.msk.f32.vlgmr.msrb.gmra.mxu1 %vm84_vm0, %v221_v19  ;;  %433 = vmatmul.msk.f32.vlgmr.msra.gmra.mxu2 %vm84_vm0, %v295_v33 }
  0xbb   :  { %435 = vmatmul.msk.f32.vlgmr.msrb.gmra.mxu3 %vm84_vm0, %v295_v33  ;;  %437 = vmatmul.msk.f32.vlgmr.msrb.gmra.mxu0 %vm84_vm0, %v295_v33 }
  0xbc   :  { %246 = vperm.xlu2 %447, %v228_v20  }
  0xc2   :  { %430 = vmatmul.msk.f32.gmra.mxu1 %vm84_vm0, %v222_v34  ;;  %434 = vmatmul.msk.f32.gmra.mxu2 %vm84_vm0, %v296_v35 }
  0xc3   :  { %436 = vmatmul.msk.f32.gmra.mxu3 %vm84_vm0, %v296_v35  ;;  %438 = vmatmul.msk.f32.gmra.mxu0 %vm84_vm0, %v296_v35 }
  0xca   :  { %431 = vmatmul.msk.f32.gmra.mxu1 %vm84_vm0, %v223_v36 }
  0xd2   :  { %432 = vmatmul.msk.f32.gmra.mxu1 %vm84_vm0, %v224_v37 }
  0xe2   :  { %v242_v48 = vpop.permute.xlu2 %241 }
 0x116   :  { %v247_v53 = vpop.permute.xlu2 %246 }
 0x137   :  { %v278_v39 = vpop.f32.mrf.mxu1 }
 0x138   :  { %v279_v40 = vadd.f32 %v278_v39, %v232_v38  ;;  %v386_v41 = vpop.f32.mrf.mxu0 }
 0x139   :  { %393 = vst.msk [vmem:[#allocation2 + $0x20] sm:$0xff] %vm84_vm0, %v386_v41 }
 0x13a   :  { %290 = vst.msk [vmem:[%s711_s8] sm:$0xff] %vm84_vm0, %v279_v40 }
 0x13d   :  { %v335_v43 = vpop.f32.mrf.mxu2 }
 0x13e   :  { %341 = vst.msk [vmem:[#allocation2] sm:$0xff] %vm84_vm0, %v335_v43  ;;  %v360_v44 = vpop.f32.mrf.mxu3 }
 0x13f   :  { %v281_v45 = vpop.f32.mrf.mxu1  ;;  %367 = vst.msk [vmem:[#allocation2 + $0x10] sm:$0xff] %vm84_vm0, %v360_v44 }
 0x140   :  { %v282_v46 = vadd.f32 %v281_v45, %v237_v42  ;;  %v389_v47 = vpop.f32.mrf.mxu0 }
 0x141   :  { %394 = vst.msk [vmem:[#allocation2 + $0x28] sm:$0xff] %vm84_vm0, %v389_v47 }
 0x142   :  { %291 = vst.msk [vmem:[%s711_s8 + $0x8] sm:$0xff] %vm84_vm0, %v282_v46 }
 0x145   :  { %v338_v49 = vpop.f32.mrf.mxu2 }
 0x146   :  { %342 = vst.msk [vmem:[#allocation2 + $0x8] sm:$0xff] %vm84_vm0, %v338_v49  ;;  %v363_v50 = vpop.f32.mrf.mxu3 }
 0x147   :  { %v284_v51 = vpop.f32.mrf.mxu1  ;;  %368 = vst.msk [vmem:[#allocation2 + $0x18] sm:$0xff] %vm84_vm0, %v363_v50 }
 0x148   :  { %v285_v52 = vadd.f32 %v284_v51, %v242_v48  ;;  %409 = dma.vmem_to_hbm [thread:$0]  %s402_s13, 768, %s404_s14, [#allocation3], %s482_s2, %s482_s2, %s483_s3  }
 0x14a   :  { %292 = vst.msk [vmem:[%s711_s8 + $0x10] sm:$0xff] %vm84_vm0, %v285_v52 }
 0x14f   :  { %v287_v54 = vpop.f32.mrf.mxu1 }
 0x150   :  { %v288_v55 = vadd.f32 %v287_v54, %v247_v53 }
 0x152   :  { %293 = vst.msk [vmem:[%s711_s8 + $0x18] sm:$0xff] %vm84_vm0, %v288_v55 }
 0x153   :  { %478 = dma.done.wait [#allocation3], 768  }
 0x154   :  { %479 = vsyncadd [#allocation3], 4294966528 }
 0x155   :  { %416 = vsyncpa [#allocation3], 1 }

</bundles_post_ra>
